<compile_context>
chip_gen: v7x
topology: tpu7x:2x2x1
jax: 0.10.0
libtpu: 0.0.40
codegen_flags: <defaults>
</compile_context>

<pallas_src>
import functools

import jax
import jax.numpy as jnp
import numpy as np
from jax import lax
from jax.experimental import pallas as pl
from jax.experimental.pallas import tpu as pltpu

# scn defaults
LEAKINESS = 0.333   # scn.LeakyReLU / scn.BatchNormLeakyReLU default leakiness
BN_EPS = 1e-4       # scn BatchNormalization default eps


# ---------------------------------------------------------------------------
# Roll probe (tiny kernels, cached).  Resolves pltpu.roll's sign convention
# (fails LOUDLY if ambiguous -- a silent sign flip would corrupt every tap) and
# whether negative shifts are accepted (fallback to modulo is purely
# representational: (t % sp) is the identical circular rotation).
# ---------------------------------------------------------------------------
@functools.lru_cache(maxsize=1)
def _probe_roll():
    x = jnp.tile(jnp.arange(128, dtype=jnp.int32)[None, :], (8, 1))

    def _k_pos(x_ref, o_ref):
        o_ref[...] = pltpu.roll(x_ref[...], shift=1, axis=1)

    y = pl.pallas_call(_k_pos, out_shape=jax.ShapeDtypeStruct((8, 128), jnp.int32))(x)
    if np.array_equal(np.asarray(y), np.asarray(jnp.roll(x, 1, axis=1))):
        sign = 1
    elif np.array_equal(np.asarray(y), np.asarray(jnp.roll(x, -1, axis=1))):
        sign = -1
    else:
        raise RuntimeError(
            "pltpu.roll direction probe failed: result matches neither jnp.roll(+1) "
            "nor jnp.roll(-1); refusing to guess tap shift signs.")

    def _k_neg(x_ref, o_ref):
        o_ref[...] = pltpu.roll(x_ref[...], shift=-1, axis=1)

    try:
        yn = pl.pallas_call(_k_neg, out_shape=jax.ShapeDtypeStruct((8, 128), jnp.int32))(x)
        neg_ok = np.array_equal(np.asarray(yn),
                                np.asarray(jnp.roll(x, -sign, axis=1)))
    except Exception:
        neg_ok = False   # fall back to equivalent non-negative shifts (same rotation)
    return sign, neg_ok


# ------------------------------ fused kernel --------------------------------

def _series_kernel(x_ref, w_ref, shift_ref, mask_ref, o_ref, *,
                   n_blocks, residual, leak, tap_shifts, c, taps_per_chunk,
                   mxu_dtype, precision):
    """Whole SparseBlockSeries for one batch element, fully resident in VMEM.

    x_ref    : (1, C, SP)            flattened zero-padded volume, channels-major, f32
    w_ref    : (n_convs, C, 27*C)    im2col weights, BN scale pre-folded, mxu_dtype
    shift_ref: (n_convs, C, 1)       folded BN shift, f32
    mask_ref : (1, 1, SP)            active-site mask, 0 at halos / tail padding, f32
    o_ref    : (1, C, SP)
    """
    m = mask_ref[0]                       # (1, SP)
    x = x_ref[0] * m                      # (C, SP) enforce sparsity invariant
    n_taps = len(tap_shifts)

    def conv_affine(v, idx):
        # K-chunked im2col: build <=128-row chunks of spatially shifted copies of v
        # (pltpu.roll = XLU slot) and accumulate chunk matmuls in f32 on the MXU.
        # Halo planes guarantee interior voxels read the correct neighbour; wrapped
        # lanes only corrupt halo/tail positions, zeroed by the mask multiply below.
        vb = v.astype(mxu_dtype)          # hoisted: one cast per conv input
        acc = None
        for t0 in range(0, n_taps, taps_per_chunk):
            t1 = min(n_taps, t0 + taps_per_chunk)
            cols = [vb if tap_shifts[t] == 0
                    else pltpu.roll(vb, shift=tap_shifts[t], axis=1)
                    for t in range(t0, t1)]
            col = cols[0] if len(cols) == 1 else jnp.concatenate(cols, axis=0)
            part = jnp.dot(w_ref[idx, :, t0 * c:t1 * c], col,
                           preferred_element_type=jnp.float32,
                           precision=precision)                  # (C, SP) f32
            acc = part if acc is None else acc + part
        return acc + shift_ref[idx]       # BN scale already folded into weights

    def act(v):
        # leaky_relu=False -> leak=0 == plain ReLU, matching scn.(BatchNorm)ReLU.
        return jnp.where(v > 0, v, leak * v)

    # TODO(synk): for very deep series switch this Python-unrolled loop to
    # lax.fori_loop with dynamic w_ref/shift_ref first-axis indexing to bound vreg
    # live ranges and compile time.
    ci = 0
    for _ in range(n_blocks):
        if residual:
            h = act(conv_affine(x, ci)) * m
            y = conv_affine(h, ci + 1)
            x = act(y + x) * m
            ci += 2
        else:
            x = act(conv_affine(x, ci)) * m
            ci += 1

    o_ref[0] = x.astype(o_ref.dtype)


# -------------------------------- wrapper ------------------------------------

def sparse_block_series(x, mask, params, *, leaky_relu, residual,
                        precision=lax.Precision.DEFAULT):
    """Forward pass of SparseBlockSeries on the dense+mask representation."""
    N, D, H, W, C = x.shape
    Dp, Hp, Wp = D + 2, H + 2, W + 2
    s_flat = Dp * Hp * Wp
    sp = ((s_flat + 127) // 128) * 128            # lane-dense flattened length
    leak = LEAKINESS if leaky_relu else 0.0

    # Fast path: bf16 MXU operands (DEFAULT precision rounds to bf16 anyway) ->
    # half the col/weight traffic.  HIGHEST keeps everything f32 for tight checks.
    mxu_dtype = jnp.float32 if precision == lax.Precision.HIGHEST else jnp.bfloat16

    # -- one-time layout plumbing: NDHWC -> channels-major flat (N, C, SP) --
    def to_flat(a):
        cc = a.shape[-1]
        a = jnp.pad(a, ((0, 0), (1, 1), (1, 1), (1, 1), (0, 0)))
        a = jnp.transpose(a, (0, 4, 1, 2, 3)).reshape(N, cc, s_flat)
        return jnp.pad(a, ((0, 0), (0, 0), (0, sp - s_flat)))

    x_flat = to_flat(x.astype(jnp.float32))
    m_flat = to_flat(mask.astype(jnp.float32))

    # -- fold every conv's params into stacked, MXU-ready tensors (BN scale folded) --
    convs = [p for blk in params for p in blk]
    n_convs = len(convs)
    k_raw = 27 * C
    w_mats = jnp.stack(
        [p["scale"].reshape(C, 1)
         * jnp.transpose(p["w"], (2, 0, 1)).reshape(C, k_raw)
         for p in convs]).astype(mxu_dtype)                       # (n, C, 27*C)
    bn_shifts = jnp.stack([p["shift"].reshape(C, 1) for p in convs])  # (n, C, 1)

    # conv tap -> flat-index offset (halo planes make interior reads in-range)
    deltas = [(kd - 1) * Hp * Wp + (kh - 1) * Wp + (kw - 1)
              for kd in range(3) for kh in range(3) for kw in range(3)]

    # Wrap-safety invariant of the circular-roll trick: with a 1-voxel halo and
    # (d, h, w) flattening order, every interior read p + delta stays inside
    # [0, s_flat), so wrapped lanes only ever land on halo/tail (masked) sites.
    max_delta = Hp * Wp + Wp + 1
    assert max(abs(d) for d in deltas) == max_delta
    interior_min = 1 * Hp * Wp + 1 * Wp + 1
    interior_max = D * Hp * Wp + H * Wp + W
    assert interior_min - max_delta >= 0 and interior_max + max_delta < s_flat, (
        "halo/flattening invariant violated: rolls would wrap into interior sites")

    sign, neg_ok = _probe_roll()
    # want rolled[p] = v[(p + d) % sp]  =>  jnp-style shift -d  => pltpu shift -sign*d
    if neg_ok:
        tap_shifts = tuple(-sign * d for d in deltas)          # minimal magnitude
    else:
        tap_shifts = tuple((-sign * d) % sp for d in deltas)   # same rotation

    # C-aware K chunking: each chunk has taps_per_chunk*C <= 128 rows (C=128 -> per-tap).
    taps_per_chunk = max(1, 128 // C)

    kern = functools.partial(
        _series_kernel, n_blocks=len(params), residual=residual, leak=leak,
        tap_shifts=tap_shifts, c=C, taps_per_chunk=taps_per_chunk,
        mxu_dtype=mxu_dtype, precision=precision)

    in_bytes = sum(a.size * a.dtype.itemsize
                   for a in (x_flat, w_mats, bn_shifts, m_flat))
    cost = pl.CostEstimate(
        flops=2 * N * n_convs * C * k_raw * sp,
        transcendentals=0,
        bytes_accessed=in_bytes + 4 * N * C * sp)

    out_flat = pl.pallas_call(
        kern,
        out_shape=jax.ShapeDtypeStruct((N, C, sp), jnp.float32),
        grid=(N,),
        in_specs=[
            pl.BlockSpec((1, C, sp), lambda n: (n, 0, 0)),
            pl.BlockSpec((n_convs, C, k_raw), lambda n: (0, 0, 0)),
            pl.BlockSpec((n_convs, C, 1), lambda n: (0, 0, 0)),
            pl.BlockSpec((1, 1, sp), lambda n: (n, 0, 0)),
        ],
        out_specs=pl.BlockSpec((1, C, sp), lambda n: (n, 0, 0)),
        compiler_params=pltpu.CompilerParams(
            dimension_semantics=("parallel",)),
        cost_estimate=cost,
    )(x_flat, w_mats, bn_shifts, m_flat)
    # TODO(synk): for realistic volumes where the per-batch (C, SP) block exceeds the
    # scoped-VMEM limit (16 MiB v5e / 32 MiB v6e,v7x defaults; 64 MiB physical on v7x),
    # add a second "parallel" grid axis over depth slabs with an n_convs-plane halo
    # (pl.Element index_map, interior-only output writes) and raise vmem_limit_bytes;
    # this also gives v7x's 2 TensorCores work when N == 1.

    out = out_flat[:, :, :s_flat].reshape(N, C, Dp, Hp, Wp)
    out = out[:, :, 1:Dp - 1, 1:Hp - 1, 1:Wp - 1]
    return jnp.transpose(out, (0, 2, 3, 4, 1)).astype(x.dtype)


# -------------------------- parameter initialization -------------------------

def init_params(key, n_blocks, planes, batch_norm, residual):
    """Deterministic parameter init.  BatchNorm is folded to (scale, shift)."""
    # TODO(synk): scn BatchNorm in training mode uses batch statistics over active
    # sites; here BN is the folded inference-mode affine from deterministic stats.
    params = []
    convs_per_block = 2 if residual else 1
    for i in range(n_blocks):
        block = []
        for j in range(convs_per_block):
            k = jax.random.fold_in(jax.random.fold_in(key, i), j)
            kw_, kg, kb, km, kv = jax.random.split(k, 5)
            w = jax.random.normal(kw_, (27, planes, planes), jnp.float32)
            w = w * (1.0 / np.sqrt(27.0 * planes))
            if batch_norm:
                gamma = 1.0 + 0.1 * jax.random.normal(kg, (planes,), jnp.float32)
                beta = 0.1 * jax.random.normal(kb, (planes,), jnp.float32)
                r_mean = 0.1 * jax.random.normal(km, (planes,), jnp.float32)
                r_var = jax.random.uniform(kv, (planes,), jnp.float32, 0.5, 1.5)
                scale = gamma / jnp.sqrt(r_var + BN_EPS)
                shift = beta - r_mean * scale
            else:
                scale = jnp.ones((planes,), jnp.float32)
                shift = jnp.zeros((planes,), jnp.float32)
            block.append({"w": w, "scale": scale, "shift": shift})
        params.append(block)
    return params


# ------------------------------ pure-JAX reference ---------------------------

def _ref_conv(x, w):
    C = x.shape[-1]
    wk = w.reshape(3, 3, 3, C, C)
    return lax.conv_general_dilated(
        x, wk, window_strides=(1, 1, 1), padding="SAME",
        dimension_numbers=("NDHWC", "DHWIO", "NDHWC"),
        precision=lax.Precision.HIGHEST)


def _ref_series(x, mask, params, *, leaky_relu, residual):
    leak = LEAKINESS if leaky_relu else 0.0
    act = lambda v: jnp.where(v > 0, v, leak * v)
    for block in params:
        if residual:
            p1, p2 = block
            h = act(_ref_conv(x, p1["w"]) * p1["scale"] + p1["shift"]) * mask
            y = _ref_conv(h, p2["w"]) * p2["scale"] + p2["shift"]
            x = act(y + x) * mask
        else:
            (p1,) = block
            x = act(_ref_conv(x, p1["w"]) * p1["scale"] + p1["shift"]) * mask
    return x


# ---------------------------------- main --------------------------------------

if __name__ == "__main__":
    # SparseBlockSeries(inplanes=16, n_blocks=2, batch_norm=True,
    #                   leaky_relu=True, residual=True)
    N, D, H, W, C = 2, 8, 8, 8, 16
    n_blocks = 2
    batch_norm, leaky_relu, residual = True, True, True

    key = jax.random.PRNGKey(0)
    kx, kmask, kp = jax.random.split(key, 3)

    mask = (jax.random.uniform(kmask, (N, D, H, W, 1)) > 0.5).astype(jnp.float32)
    x = jax.random.normal(kx, (N, D, H, W, C), jnp.float32) * mask  # zeros off-site
    params = init_params(kp, n_blocks, C, batch_norm, residual)

    # Fast path: fused series, bf16 MXU operands (equivalent to DEFAULT precision).
    out = jax.block_until_ready(
        sparse_block_series(x, mask, params, leaky_relu=leaky_relu,
                            residual=residual,
                            precision=lax.Precision.DEFAULT))

    ref = jax.block_until_ready(
        _ref_series(x, mask, params, leaky_relu=leaky_relu, residual=residual))

    # bf16-rounded MXU operands -> loosened tolerance for the fast path ...
    np.testing.assert_allclose(np.asarray(out), np.asarray(ref),
                               rtol=5e-2, atol=5e-2)

    # ... and the tight structural check runs the same kernel all-f32 at HIGHEST.
    out_hi = jax.block_until_ready(
        sparse_block_series(x, mask, params, leaky_relu=leaky_relu,
                            residual=residual,
                            precision=lax.Precision.HIGHEST))
    np.testing.assert_allclose(np.asarray(out_hi), np.asarray(ref),
                               rtol=1e-3, atol=1e-3)

    print("KERNEL_OK")
</pallas_src>

<mosaic_0001>
module attributes {stable_mosaic.version = 11 : i64} {
  func.func @_k_pos(%arg0: memref<8x128xi32, #tpu.memory_space<vmem>>, %arg1: memref<8x128xi32, #tpu.memory_space<vmem>>) attributes {dimension_semantics = [], scalar_prefetch = 0 : i64, scratch_operands = 0 : i64, tpu.core_type = #tpu.core_type<tc>} {
    %c0 = arith.constant 0 : index
    %c0_0 = arith.constant 0 : index
    %0 = vector.load %arg0[%c0, %c0_0] : memref<8x128xi32, #tpu.memory_space<vmem>>, vector<8x128xi32>
    %c1_i32 = arith.constant 1 : i32
    %1 = tpu.dynamic_rotate %0 by %c1_i32 dim 1 : vector<8x128xi32>, i32 -> vector<8x128xi32>
    %c0_1 = arith.constant 0 : index
    %c0_2 = arith.constant 0 : index
    %2 = vector.load %arg1[%c0_1, %c0_2] : memref<8x128xi32, #tpu.memory_space<vmem>>, vector<8x128xi32>
    tpu.vector_store %arg1[%c0_1, %c0_2], %1 {strides = array<i32>} : memref<8x128xi32, #tpu.memory_space<vmem>>, vector<8x128xi32>,
    return
  }
}

</mosaic_0001>

<bundles_post_ra>
// kernel: tpu_custom_call.1
= control target key start
LH: loop header
LB: loop body
LE: loop exit
PB: predicated region body
PF: predicated region fallthrough
CT: control target
= control target key end

     0   :  { %6 = vsyncpa [#allocation3], 0  ;;  %s128_s0 = inlined_call_operand.hbm [shape: s32[8,128], index: 0, kind: input, shape index: {}]   ;;  %s129_s1 = inlined_call_operand.hbm [shape: s32[8,128], index: 1, kind: output, shape index: {}]  }
   0x1   :  { %7 = vsyncpa [#allocation4], 0  ;;  %s91_s6 = smov [#allocation2]   ;;  %s43_s10 = scalar_lea.hbm %s128_s0, 128 }
   0x2   :  { %s14_s7 = sshll.u32 %s91_s6, 4  ;;  %p44_p0 = scmp.ne.s32.totalorder %s128_s0, %s43_s10  ;;  %s15_s7 = int_to_ptr.vmem [resolvable:$true] %s14_s7 }
   0x3   :  { %p47_p1 = scmp.lt.u32.totalorder %s43_s10, %s128_s0 }
   0x5   :  { %p49_p2 = pnand %p47_p1, %p44_p0 }
   0x7   :  { %52 = shalt.err (!%p49_p2)
}
   0x8   :  { %s53_s15 = scalar_lea.vmem %s15_s7, 128  ;;  %p58_p4 = scmp.lt.s32.totalorder %s15_s7, %s15_s7 }
   0x9   :  { %p54_p3 = scmp.ne.s32.totalorder %s15_s7, %s53_s15  ;;  %p59_p5 = scmp.lt.s32.totalorder %s53_s15, %s53_s15 }
   0xb   :  { %p60_p6 = por %p59_p5, %p58_p4 }
   0xd   :  { %p61_p7 = pnand %p60_p6, %p54_p3 }
   0xf   :  { %64 = shalt.err (!%p61_p7)
}
  0x10   :  { %17 = dma.hbm_to_vmem [thread:$0]  %s128_s0, 128, %s15_s7, [#allocation3]  }
  0x11   :  { %87 = dma.done.wait [#allocation3], 128  }
  0x12   :  { %88 = vsyncadd [#allocation3], 4294967168  ;;  %v21_v0 = vld [vmem:[#allocation2] sm:$0xff]  ;;  %s92_s18 = smov 1   ;;  %s93_s19 = smov [#allocation5]  }
  0x13   :  { %22 = vrot.lane.b32.xlu0 %v21_v0, %s92_s18  ;;  %s31_s20 = sshll.u32 %s93_s19, 4  ;;  %s32_s20 = int_to_ptr.vmem [resolvable:$true] %s31_s20 }
  0x14   :  { %s65_s21 = scalar_lea.vmem %s32_s20, 128  ;;  %p70_p9 = scmp.lt.s32.totalorder %s32_s20, %s32_s20 }
  0x15   :  { %p66_p8 = scmp.ne.s32.totalorder %s32_s20, %s65_s21  ;;  %p71_p10 = scmp.lt.s32.totalorder %s65_s21, %s65_s21 }
  0x17   :  { %p72_p11 = por %p71_p10, %p70_p9 }
  0x19   :  { %p73_p12 = pnand %p72_p11, %p66_p8 }
  0x85   :  { %v23_v1 = vpop.permute.xlu0 %22 }
  0x86   :  { %24 = vst [vmem:[#allocation5] sm:$0xff] %v23_v1 }
  0x87   :  { %76 = shalt.err (!%p73_p12)
}
  0x88   :  { %s77_s0 = scalar_lea.hbm %s129_s1, 128 }
  0x89   :  { %p78_p13 = scmp.ne.s32.totalorder %s129_s1, %s77_s0  ;;  %p81_p0 = scmp.lt.u32.totalorder %s77_s0, %s129_s1 }
  0x8b   :  { %p83_p1 = pnand %p81_p0, %p78_p13 }
  0x8d   :  { %86 = shalt.err (!%p83_p1)
}
  0x8e   :  { %34 = dma.vmem_to_hbm [thread:$0]  %s32_s20, 128, %s129_s1, [#allocation4]  }
  0x8f   :  { %89 = dma.done.wait [#allocation4], 128  }
  0x90   :  { %90 = vsyncadd [#allocation4], 4294967168 }
  0x91   :  { %38 = vsyncpa [#allocation3], 1 }
  0x92   :  { %39 = vsyncpa [#allocation4], 1 }

</bundles_post_ra>
